<compile_context>
chip_gen: v7x
topology: tpu7x:2x2x1
jax: 0.10.0
libtpu: 0.0.40
codegen_flags: <defaults>
</compile_context>

<pallas_src>
import functools

import jax
import jax.numpy as jnp
from jax import lax
from jax.experimental import pallas as pl
from jax.experimental.pallas import tpu as pltpu


# ---------------------------------------------------------------------------
# Division-free floor-div helpers (vector int div/mod avoided on purpose):
# q = x // d via range compares against an iota of bucket ids, plus one small
# reduction to read the bucket index back out.  Pure VPU/XLU work.
# ---------------------------------------------------------------------------
def _floordiv_cols(x_col, d, n_buckets):
    """x_col: (R, 1) int32, x >= 0.  Returns (x // d as (R, 1),
    one-hot (R, n_buckets) bool).  Out-of-range x gives an all-zero row."""
    rows = x_col.shape[0]
    q_lane = lax.broadcasted_iota(jnp.int32, (rows, n_buckets), 1)
    lo = q_lane * d
    oh = jnp.logical_and(x_col >= lo, x_col < lo + d)
    q = jnp.sum(jnp.where(oh, q_lane, 0), axis=1, keepdims=True)
    return q, oh


def _floordiv_rows(x_row, d, n_buckets):
    """x_row: (1, C) int32.  Returns (x // d as (1, C),
    one-hot (n_buckets, C) bool)."""
    cols = x_row.shape[1]
    q_sub = lax.broadcasted_iota(jnp.int32, (n_buckets, cols), 0)
    lo = q_sub * d
    oh = jnp.logical_and(x_row >= lo, x_row < lo + d)
    q = jnp.sum(jnp.where(oh, q_sub, 0), axis=0, keepdims=True)
    return q, oh


# ---------------------------------------------------------------------------
# Fused kernel: cnn projection + tanh + score + cat(dim0).view(bs,grid) remap
# accumulation + row softmax.  Two static tiling modes share one body.
# ---------------------------------------------------------------------------
def _spatial_attn_kernel(lstm_ref, cnn_ref, wl_ref, wc_ref, bias_ref, ww_ref,
                         out_ref, h_acc, s_acc,
                         *, bs, grid_num, tile, n_rows, batch_mode):
    if batch_mode:
        b_id = pl.program_id(0)
        gt = pl.program_id(1)
        is_first = jnp.logical_and(b_id == 0, gt == 0)
        is_last = jnp.logical_and(b_id == pl.num_programs(0) - 1,
                                  gt == pl.num_programs(1) - 1)
    else:
        t = pl.program_id(0)
        is_first = t == 0
        is_last = t == pl.num_programs(0) - 1

    # ---- once per call: H = lstm @ Wl^T + (bl + bc); zero the score acc ----
    @pl.when(is_first)
    def _():
        h_acc[...] = (jnp.dot(lstm_ref[...], wl_ref[...],
                              preferred_element_type=jnp.float32)
                      + bias_ref[...])
        s_acc[...] = jnp.zeros_like(s_acc)

    # ---- per tile: project the cnn rows on the MXU ----
    cnn = cnn_ref[0] if batch_mode else cnn_ref[...]            # (tile, cs)
    v = jnp.dot(cnn, wc_ref[...], preferred_element_type=jnp.float32)

    r_col = lax.broadcasted_iota(jnp.int32, (tile, 1), 0)
    r_row = lax.broadcasted_iota(jnp.int32, (1, tile), 1)

    if batch_mode:
        # Each tile holds rows of exactly ONE batch: H is a broadcast add
        # (no one-hot MXU matmul — perf review item 3).
        g_col = gt * tile + r_col
        valid = g_col < grid_num
        h_tile = h_acc[pl.ds(b_id, 1), :]                       # (1, P)
        k_col = g_col * bs + b_id                               # grid-major idx
        k_row = (gt * tile + r_row) * bs + b_id
    else:
        # Batch-major row m = b*grid_num + g spanning several batches:
        # replicate H rows via an in-kernel one-hot (no HBM constants).
        m_col = t * tile + r_col
        valid = m_col < n_rows
        b_col, b_oh = _floordiv_cols(m_col, grid_num, bs)       # (tile, bs)
        h_tile = jnp.dot(b_oh.astype(jnp.float32), h_acc[...],
                         preferred_element_type=jnp.float32)    # (tile, P)
        g_col = m_col - b_col * grid_num
        k_col = g_col * bs + b_col
        m_row = t * tile + r_row
        b_row, _ = _floordiv_rows(m_row, grid_num, bs)
        k_row = (m_row - b_row * grid_num) * bs + b_row

    act = jnp.tanh(v + h_tile)
    # VPU multiply + lane reduce instead of a 1-column MXU matmul.
    z = jnp.sum(act * ww_ref[...], axis=-1, keepdims=True)      # (tile, 1)
    z = jnp.where(valid, z, 0.0)     # pad rows may hold garbage/NaN -> zero

    # ---- scatter-accumulate into S[i, j], i = k // grid, j = k % grid ----
    # (this is the torch.cat(dim=0).view(bs, grid_num) permutation, expressed
    #  as a tiny matmul with iota-generated one-hots; exact, since every S
    #  element receives exactly one non-zero term over the whole grid.)
    i_col, _ = _floordiv_cols(k_col, grid_num, bs)
    j_col = k_col - i_col * grid_num
    j_lane = lax.broadcasted_iota(jnp.int32, (tile, grid_num), 1)
    ccol = jnp.where(j_lane == j_col, 1.0, 0.0)                 # (tile, grid)
    _, i_oh = _floordiv_rows(k_row, grid_num, bs)               # (bs, tile)
    arow = i_oh.astype(jnp.float32)
    s_acc[...] += jnp.dot(arow, z * ccol,
                          preferred_element_type=jnp.float32)   # (bs, grid)

    # ---- last tile: row softmax of the re-viewed scores ----
    @pl.when(is_last)
    def _():
        s = s_acc[...]
        e = jnp.exp(s - jnp.max(s, axis=-1, keepdims=True))
        out_ref[...] = (e / jnp.sum(e, axis=-1, keepdims=True)).astype(
            out_ref.dtype)


# ---------------------------------------------------------------------------
# One-time weight prep (review items 4, 8, 12): transpose, fold biases, pad
# the projection dim to a 128-lane multiple, cast Wc^T to the compute dtype.
# ---------------------------------------------------------------------------
def prepare_params(params, compute_dtype=jnp.float32):
    wl, bl, wc, bc, ww = (params["wl"], params["bl"], params["wc"],
                          params["bc"], params["ww"])
    proj, hs = wl.shape
    cs = wc.shape[1]
    proj_pad = ((proj + 127) // 128) * 128

    def pad_p(x):
        return x if x.shape[1] == proj_pad else jnp.pad(
            x, ((0, 0), (0, proj_pad - x.shape[1])))

    return {
        "wl_t": pad_p(wl.T).astype(jnp.float32),                 # (hs, Pp)
        "wc_t": pad_p(wc.T).astype(compute_dtype),               # (cs, Pp)
        "bias": pad_p((bl + bc).reshape(1, proj)).astype(jnp.float32),
        "ww": pad_p(ww.reshape(1, proj)).astype(jnp.float32),
        "hs": hs, "cs": cs, "proj_pad": proj_pad,
    }


def spatial_attention_forward(lstm_hidden, cnn_feat, prep, *,
                              tile_rows=None, batch_mode=None, cnn_buffers=2):
    """Pallas implementation of SpatialAttentionLayer.forward.

    lstm_hidden: (bs, lstm_hidden_size) f32
    cnn_feat:    (bs, grid_num, cnn_feat_size); ideally already stored in the
                 compute dtype used for prepare_params (bf16 halves HBM bytes)
    prep:        output of prepare_params(params, compute_dtype)
    returns:     (bs, grid_num) f32 spatial attention weights
    """
    wl_t, wc_t, bias, ww = prep["wl_t"], prep["wc_t"], prep["bias"], prep["ww"]
    bs, hs = lstm_hidden.shape
    b2, grid_num, cs = cnn_feat.shape
    assert b2 == bs and hs == prep["hs"] and cs == prep["cs"]
    proj_pad = prep["proj_pad"]
    n = bs * grid_num

    if cnn_feat.dtype != wc_t.dtype:
        cnn_feat = cnn_feat.astype(wc_t.dtype)   # avoid by storing cnn in bf16
    lstm_hidden = lstm_hidden.astype(jnp.float32)
    isz = jnp.dtype(wc_t.dtype).itemsize

    # ---- VMEM-budget-aware tiling (v5e/v6e: 128 MiB phys, v7x: 64 MiB) ----
    try:
        info = pltpu.get_tpu_info()
        vmem_cap = int(getattr(info, "vmem_capacity_bytes", 64 * 2**20))
    except Exception:                                    # pragma: no cover
        vmem_cap = 64 * 2**20
    vmem_limit = int(min(vmem_cap * 3 // 4, 112 * 2**20))

    nbuf = max(2, int(cnn_buffers))
    resident = (2 * (cs * proj_pad * isz + hs * proj_pad * 4 + bs * hs * 4
                     + 2 * proj_pad * 4 + bs * grid_num * 4)
                + bs * proj_pad * 4 + bs * grid_num * 4)
    per_row = nbuf * cs * isz + 4 * proj_pad * 4 + 2 * (bs + grid_num) * 4
    budget = max(vmem_limit * 3 // 5 - resident, 64 * 1024)

    if batch_mode is None:
        # Per-batch tiles drop the one-hot H matmul but cost >= one grid step
        # per batch; only worth it for reasonably large grids (review item 3).
        batch_mode = grid_num >= 64

    def _fit(full_dim, request):
        size = int(budget // per_row) if request is None else int(request)
        size = max(8, min(size, 2048))
        if size >= full_dim:
            return full_dim                   # full-dim block is always legal
        return max(8, (size // 8) * 8)        # (8, 128) sublane rule

    cnn_kw = {} if nbuf == 2 else {"pipeline_mode": pl.Buffered(nbuf)}

    if batch_mode:
        tile = _fit(grid_num, tile_rows)
        grid = (bs, pl.cdiv(grid_num, tile))
        cnn_arr = cnn_feat                                       # (bs, g, cs)
        cnn_spec = pl.BlockSpec((1, tile, cs), lambda b, g: (b, g, 0), **cnn_kw)
        const = lambda b, g: (0, 0)
        dims = ("arbitrary", "arbitrary")
    else:
        tile = _fit(n, tile_rows)
        grid = (pl.cdiv(n, tile),)
        cnn_arr = cnn_feat.reshape(n, cs)    # contiguous collapse, no HBM copy
        cnn_spec = pl.BlockSpec((tile, cs), lambda t: (t, 0), **cnn_kw)
        const = lambda t: (0, 0)
        dims = ("arbitrary",)

    kernel = functools.partial(_spatial_attn_kernel, bs=bs, grid_num=grid_num,
                               tile=tile, n_rows=n, batch_mode=batch_mode)

    # TODO(synk): v7x-only follow-up — split the row range over the two
    # TensorCores with a leading "parallel" axis and combine the two partial
    # score planes in a tiny epilogue (review item 11); the single-core path
    # below is correct on all generations.
    return pl.pallas_call(
        kernel,
        out_shape=jax.ShapeDtypeStruct((bs, grid_num), jnp.float32),
        grid=grid,
        in_specs=[
            pl.BlockSpec((bs, hs), const),               # lstm (resident)
            cnn_spec,                                    # cnn rows (pipelined)
            pl.BlockSpec((hs, proj_pad), const),         # Wl^T (resident)
            pl.BlockSpec((cs, proj_pad), const),         # Wc^T (resident)
            pl.BlockSpec((1, proj_pad), const),          # bl + bc (folded)
            pl.BlockSpec((1, proj_pad), const),          # w row
        ],
        out_specs=pl.BlockSpec((bs, grid_num), const),
        scratch_shapes=[
            pltpu.VMEM((bs, proj_pad), jnp.float32),     # H (computed once)
            pltpu.VMEM((bs, grid_num), jnp.float32),     # score accumulator S
        ],
        compiler_params=pltpu.CompilerParams(
            dimension_semantics=dims,
            vmem_limit_bytes=vmem_limit),
    )(lstm_hidden, cnn_arr, wl_t, wc_t, bias, ww)


# ---------------------------------------------------------------------------
# Parameter init + pure-JAX reference (PyTorch transcription incl. view quirk)
# ---------------------------------------------------------------------------
def init_params(key, lstm_hidden_size, cnn_feat_size, projected_size):
    k1, k2, k3, k4, k5 = jax.random.split(key, 5)
    kl = 1.0 / jnp.sqrt(lstm_hidden_size)
    kc = 1.0 / jnp.sqrt(cnn_feat_size)
    kp = 1.0 / jnp.sqrt(projected_size)
    return {
        "wl": jax.random.uniform(k1, (projected_size, lstm_hidden_size),
                                 jnp.float32, -kl, kl),
        "bl": jax.random.uniform(k2, (projected_size,), jnp.float32, -kl, kl),
        "wc": jax.random.uniform(k3, (projected_size, cnn_feat_size),
                                 jnp.float32, -kc, kc),
        "bc": jax.random.uniform(k4, (projected_size,), jnp.float32, -kc, kc),
        "ww": jax.random.uniform(k5, (1, projected_size), jnp.float32,
                                 -kp, kp),
    }


def reference_forward(lstm_hidden, cnn_feat, params):
    wl, bl, wc, bc, ww = (params["wl"], params["bl"], params["wc"],
                          params["bc"], params["ww"])
    bs, grid_num, _ = cnn_feat.shape
    h = lstm_hidden @ wl.T + bl
    zs = []
    for g in range(grid_num):
        v = cnn_feat[:, g, :] @ wc.T + bc
        zs.append(jnp.tanh(h + v) @ ww.T)                # (bs, 1)
    w = jnp.concatenate(zs, axis=0)                      # (grid_num*bs, 1)
    w = w.reshape(bs, grid_num)                          # PyTorch .view quirk
    return jax.nn.softmax(w, axis=1)


if __name__ == "__main__":
    cases = [
        # row mode, single tile, proj padded 32 -> 128
        dict(bs=2, grid_num=8, hs=32, cs=16, proj=32),
        # row mode, multi tile with ragged tail + bs != grid_num (view quirk)
        dict(bs=3, grid_num=5, hs=16, cs=24, proj=48, tile_rows=8),
        # batch-aligned mode forced, partial last grid tile + masking
        dict(bs=3, grid_num=20, hs=16, cs=128, proj=40, batch_mode=True,
             tile_rows=8),
        # auto heuristics pick batch-aligned mode (grid_num >= 64)
        dict(bs=4, grid_num=64, hs=32, cs=256, proj=128),
        # bf16 MXU inputs (halved cnn HBM stream), looser tolerance
        dict(bs=2, grid_num=8, hs=32, cs=128, proj=32, bf16=True),
    ]
    for idx, cfg in enumerate(cases):
        key = jax.random.fold_in(jax.random.PRNGKey(0), idx)
        kp, kx, ky = jax.random.split(key, 3)
        params = init_params(kp, cfg["hs"], cfg["cs"], cfg["proj"])
        lstm_hidden = jax.random.normal(kx, (cfg["bs"], cfg["hs"]), jnp.float32)
        cnn_feat = jax.random.normal(
            ky, (cfg["bs"], cfg["grid_num"], cfg["cs"]), jnp.float32)

        use_bf16 = cfg.get("bf16", False)
        cdt = jnp.bfloat16 if use_bf16 else jnp.float32
        prep = prepare_params(params, compute_dtype=cdt)

        out = spatial_attention_forward(
            lstm_hidden, cnn_feat.astype(cdt), prep,
            tile_rows=cfg.get("tile_rows"),
            batch_mode=cfg.get("batch_mode"))
        out = jax.block_until_ready(out)

        ref = reference_forward(lstm_hidden, cnn_feat, params)
        assert out.shape == (cfg["bs"], cfg["grid_num"])
        atol = 3e-2 if use_bf16 else 5e-5
        rtol = 5e-2 if use_bf16 else 5e-5
        assert jnp.allclose(out, ref, atol=atol, rtol=rtol), (idx, out, ref)
        assert jnp.allclose(jnp.sum(out, axis=1),
                            jnp.ones((cfg["bs"],)), atol=1e-5)

    print("KERNEL_OK")
</pallas_src>

<mosaic_0001>
module attributes {stable_mosaic.version = 11 : i64} {
  func.func @_spatial_attn_kernel(%arg0: i32, %arg1: memref<2x32xf32, #tpu.memory_space<vmem>>, %arg2: memref<16x16xf32, #tpu.memory_space<vmem>>, %arg3: memref<32x128xf32, #tpu.memory_space<vmem>>, %arg4: memref<16x128xf32, #tpu.memory_space<vmem>>, %arg5: memref<1x128xf32, #tpu.memory_space<vmem>>, %arg6: memref<1x128xf32, #tpu.memory_space<vmem>>, %arg7: memref<2x8xf32, #tpu.memory_space<vmem>>, %arg8: memref<2x128xf32, #tpu.memory_space<vmem>>, %arg9: memref<2x8xf32, #tpu.memory_space<vmem>>) attributes {dimension_semantics = [#tpu.dimension_semantics<arbitrary>], iteration_bounds = array<i64: 1>, scalar_prefetch = 0 : i64, scratch_operands = 2 : i64, tpu.core_type = #tpu.core_type<tc>, window_params = [{pipeline_mode = #tpu.pipeline_mode<synchronous>, transform_indices = @transform_0, window_bounds = array<i64: 2, 32>}, {transform_indices = @transform_1, window_bounds = array<i64: 16, 16>}, {pipeline_mode = #tpu.pipeline_mode<synchronous>, transform_indices = @transform_2, window_bounds = array<i64: 32, 128>}, {pipeline_mode = #tpu.pipeline_mode<synchronous>, transform_indices = @transform_3, window_bounds = array<i64: 16, 128>}, {pipeline_mode = #tpu.pipeline_mode<synchronous>, transform_indices = @transform_4, window_bounds = array<i64: 1, 128>}, {pipeline_mode = #tpu.pipeline_mode<synchronous>, transform_indices = @transform_5, window_bounds = array<i64: 1, 128>}, {pipeline_mode = #tpu.pipeline_mode<synchronous>, transform_indices = @transform_6, window_bounds = array<i64: 2, 8>}]} {
    %c0_i32 = arith.constant 0 : i32
    %0 = arith.cmpi eq, %arg0, %c0_i32 : i32
    %c0_i32_0 = arith.constant 0 : i32
    %1 = arith.cmpi eq, %arg0, %c0_i32_0 : i32
    %2 = arith.extui %0 : i1 to i32
    %c0_i32_1 = arith.constant 0 : i32
    %3 = arith.cmpi ne, %2, %c0_i32_1 : i32
    scf.if %3 {
      %c0_39 = arith.constant 0 : index
      %c0_40 = arith.constant 0 : index
      %113 = vector.load %arg1[%c0_39, %c0_40] : memref<2x32xf32, #tpu.memory_space<vmem>>, vector<2x32xf32>
      %c0_41 = arith.constant 0 : index
      %c0_42 = arith.constant 0 : index
      %114 = vector.load %arg3[%c0_41, %c0_42] : memref<32x128xf32, #tpu.memory_space<vmem>>, vector<32x128xf32>
      %cst_43 = arith.constant dense<0.000000e+00> : vector<2x128xf32>
      %115 = tpu.matmul %113, %114, %cst_43 {dimension_numbers = #tpu.dot_dimension_numbers<[1], [0], [0], [1], [0, 0, 1, 1], [], []>} : vector<2x32xf32>, vector<32x128xf32>, vector<2x128xf32> -> vector<2x128xf32>
      %c0_44 = arith.constant 0 : index
      %c0_45 = arith.constant 0 : index
      %116 = vector.load %arg5[%c0_44, %c0_45] : memref<1x128xf32, #tpu.memory_space<vmem>>, vector<1x128xf32>
      %117 = vector.broadcast %116 : vector<1x128xf32> to vector<2x128xf32>
      %118 = arith.addf %115, %117 : vector<2x128xf32>
      %c0_46 = arith.constant 0 : index
      %c0_47 = arith.constant 0 : index
      %119 = vector.load %arg8[%c0_46, %c0_47] : memref<2x128xf32, #tpu.memory_space<vmem>>, vector<2x128xf32>
      tpu.vector_store %arg8[%c0_46, %c0_47], %118 {strides = array<i32>} : memref<2x128xf32, #tpu.memory_space<vmem>>, vector<2x128xf32>,
      %cst_48 = arith.constant 0.000000e+00 : f32
      %120 = vector.broadcast %cst_48 : f32 to vector<2x8xf32>
      %c0_49 = arith.constant 0 : index
      %c0_50 = arith.constant 0 : index
      %121 = vector.load %arg9[%c0_49, %c0_50] : memref<2x8xf32, #tpu.memory_space<vmem>>, vector<2x8xf32>
      tpu.vector_store %arg9[%c0_49, %c0_50], %120 {strides = array<i32>} : memref<2x8xf32, #tpu.memory_space<vmem>>, vector<2x8xf32>,
    } else {
    }
    %c0 = arith.constant 0 : index
    %c0_2 = arith.constant 0 : index
    %4 = vector.load %arg2[%c0, %c0_2] : memref<16x16xf32, #tpu.memory_space<vmem>>, vector<16x16xf32>
    %c0_3 = arith.constant 0 : index
    %c0_4 = arith.constant 0 : index
    %5 = vector.load %arg4[%c0_3, %c0_4] : memref<16x128xf32, #tpu.memory_space<vmem>>, vector<16x128xf32>
    %cst = arith.constant dense<0.000000e+00> : vector<16x128xf32>
    %6 = tpu.matmul %4, %5, %cst {dimension_numbers = #tpu.dot_dimension_numbers<[1], [0], [0], [1], [0, 0, 1, 1], [], []>} : vector<16x16xf32>, vector<16x128xf32>, vector<16x128xf32> -> vector<16x128xf32>
    %7 = tpu.iota {dimensions = array<i32: 0>} : vector<16x1xi32>
    %8 = tpu.iota {dimensions = array<i32: 1>} : vector<1x16xi32>
    %c16_i32 = arith.constant 16 : i32
    %9 = arith.muli %arg0, %c16_i32 : i32
    %10 = vector.broadcast %9 : i32 to vector<16x1xi32>
    %11 = arith.addi %10, %7 : vector<16x1xi32>
    %c16_i32_5 = arith.constant 16 : i32
    %12 = vector.broadcast %c16_i32_5 : i32 to vector<16x1xi32>
    %13 = arith.cmpi slt, %11, %12 : vector<16x1xi32>
    %14 = tpu.iota {dimensions = array<i32: 1>} : vector<16x2xi32>
    %c8_i32 = arith.constant 8 : i32
    %15 = vector.broadcast %c8_i32 : i32 to vector<16x2xi32>
    %16 = arith.muli %14, %15 : vector<16x2xi32>
    %17 = vector.broadcast %11 : vector<16x1xi32> to vector<16x2xi32>
    %18 = arith.cmpi sge, %17, %16 : vector<16x2xi32>
    %c8_i32_6 = arith.constant 8 : i32
    %19 = vector.broadcast %c8_i32_6 : i32 to vector<16x2xi32>
    %20 = arith.addi %16, %19 : vector<16x2xi32>
    %21 = vector.broadcast %11 : vector<16x1xi32> to vector<16x2xi32>
    %22 = arith.cmpi slt, %21, %20 : vector<16x2xi32>
    %23 = arith.andi %18, %22 : vector<16x2xi1>
    %c0_i32_7 = arith.constant 0 : i32
    %24 = vector.broadcast %c0_i32_7 : i32 to vector<16x2xi32>
    %25 = arith.select %23, %14, %24 : vector<16x2xi1>, vector<16x2xi32>
    %cst_8 = arith.constant dense<0> : vector<16xi32>
    %26 = vector.multi_reduction <add>, %25, %cst_8 [1] : vector<16x2xi32> to vector<16xi32>
    %27 = vector.shape_cast %26 : vector<16xi32> to vector<16x1xi32>
    %28 = arith.extui %23 : vector<16x2xi1> to vector<16x2xi32>
    %29 = arith.sitofp %28 : vector<16x2xi32> to vector<16x2xf32>
    %c0_9 = arith.constant 0 : index
    %c0_10 = arith.constant 0 : index
    %30 = vector.load %arg8[%c0_9, %c0_10] : memref<2x128xf32, #tpu.memory_space<vmem>>, vector<2x128xf32>
    %cst_11 = arith.constant dense<0.000000e+00> : vector<16x128xf32>
    %31 = tpu.matmul %29, %30, %cst_11 {dimension_numbers = #tpu.dot_dimension_numbers<[1], [0], [0], [1], [0, 0, 1, 1], [], []>} : vector<16x2xf32>, vector<2x128xf32>, vector<16x128xf32> -> vector<16x128xf32>
    %c8_i32_12 = arith.constant 8 : i32
    %32 = vector.broadcast %c8_i32_12 : i32 to vector<16x1xi32>
    %33 = arith.muli %27, %32 : vector<16x1xi32>
    %34 = arith.subi %11, %33 : vector<16x1xi32>
    %c2_i32 = arith.constant 2 : i32
    %35 = vector.broadcast %c2_i32 : i32 to vector<16x1xi32>
    %36 = arith.muli %34, %35 : vector<16x1xi32>
    %37 = arith.addi %36, %27 : vector<16x1xi32>
    %c16_i32_13 = arith.constant 16 : i32
    %38 = arith.muli %arg0, %c16_i32_13 : i32
    %39 = vector.broadcast %38 : i32 to vector<1x16xi32>
    %40 = arith.addi %39, %8 : vector<1x16xi32>
    %41 = tpu.iota {dimensions = array<i32: 0>} : vector<2x16xi32>
    %c8_i32_14 = arith.constant 8 : i32
    %42 = vector.broadcast %c8_i32_14 : i32 to vector<2x16xi32>
    %43 = arith.muli %41, %42 : vector<2x16xi32>
    %44 = vector.broadcast %40 : vector<1x16xi32> to vector<2x16xi32>
    %45 = arith.cmpi sge, %44, %43 : vector<2x16xi32>
    %c8_i32_15 = arith.constant 8 : i32
    %46 = vector.broadcast %c8_i32_15 : i32 to vector<2x16xi32>
    %47 = arith.addi %43, %46 : vector<2x16xi32>
    %48 = vector.broadcast %40 : vector<1x16xi32> to vector<2x16xi32>
    %49 = arith.cmpi slt, %48, %47 : vector<2x16xi32>
    %50 = arith.andi %45, %49 : vector<2x16xi1>
    %c0_i32_16 = arith.constant 0 : i32
    %51 = vector.broadcast %c0_i32_16 : i32 to vector<2x16xi32>
    %52 = arith.select %50, %41, %51 : vector<2x16xi1>, vector<2x16xi32>
    %cst_17 = arith.constant dense<0> : vector<16xi32>
    %53 = vector.multi_reduction <add>, %52, %cst_17 [0] : vector<2x16xi32> to vector<16xi32>
    %54 = vector.shape_cast %53 : vector<16xi32> to vector<1x16xi32>
    %c8_i32_18 = arith.constant 8 : i32
    %55 = vector.broadcast %c8_i32_18 : i32 to vector<1x16xi32>
    %56 = arith.muli %54, %55 : vector<1x16xi32>
    %57 = arith.subi %40, %56 : vector<1x16xi32>
    %c2_i32_19 = arith.constant 2 : i32
    %58 = vector.broadcast %c2_i32_19 : i32 to vector<1x16xi32>
    %59 = arith.muli %57, %58 : vector<1x16xi32>
    %60 = arith.addi %59, %54 : vector<1x16xi32>
    %61 = arith.addf %6, %31 : vector<16x128xf32>
    %62 = math.tanh %61 : vector<16x128xf32>
    %c0_20 = arith.constant 0 : index
    %c0_21 = arith.constant 0 : index
    %63 = vector.load %arg6[%c0_20, %c0_21] : memref<1x128xf32, #tpu.memory_space<vmem>>, vector<1x128xf32>
    %64 = vector.broadcast %63 : vector<1x128xf32> to vector<16x128xf32>
    %65 = arith.mulf %62, %64 : vector<16x128xf32>
    %cst_22 = arith.constant dense<0.000000e+00> : vector<16xf32>
    %66 = vector.multi_reduction <add>, %65, %cst_22 [1] : vector<16x128xf32> to vector<16xf32>
    %67 = vector.shape_cast %66 : vector<16xf32> to vector<16x1xf32>
    %cst_23 = arith.constant 0.000000e+00 : f32
    %68 = vector.broadcast %cst_23 : f32 to vector<16x1xf32>
    %69 = arith.select %13, %67, %68 : vector<16x1xi1>, vector<16x1xf32>
    %70 = tpu.iota {dimensions = array<i32: 1>} : vector<16x2xi32>
    %c8_i32_24 = arith.constant 8 : i32
    %71 = vector.broadcast %c8_i32_24 : i32 to vector<16x2xi32>
    %72 = arith.muli %70, %71 : vector<16x2xi32>
    %73 = vector.broadcast %37 : vector<16x1xi32> to vector<16x2xi32>
    %74 = arith.cmpi sge, %73, %72 : vector<16x2xi32>
    %c8_i32_25 = arith.constant 8 : i32
    %75 = vector.broadcast %c8_i32_25 : i32 to vector<16x2xi32>
    %76 = arith.addi %72, %75 : vector<16x2xi32>
    %77 = vector.broadcast %37 : vector<16x1xi32> to vector<16x2xi32>
    %78 = arith.cmpi slt, %77, %76 : vector<16x2xi32>
    %79 = arith.andi %74, %78 : vector<16x2xi1>
    %c0_i32_26 = arith.constant 0 : i32
    %80 = vector.broadcast %c0_i32_26 : i32 to vector<16x2xi32>
    %81 = arith.select %79, %70, %80 : vector<16x2xi1>, vector<16x2xi32>
    %cst_27 = arith.constant dense<0> : vector<16xi32>
    %82 = vector.multi_reduction <add>, %81, %cst_27 [1] : vector<16x2xi32> to vector<16xi32>
    %83 = vector.shape_cast %82 : vector<16xi32> to vector<16x1xi32>
    %c8_i32_28 = arith.constant 8 : i32
    %84 = vector.broadcast %c8_i32_28 : i32 to vector<16x1xi32>
    %85 = arith.muli %83, %84 : vector<16x1xi32>
    %86 = arith.subi %37, %85 : vector<16x1xi32>
    %87 = tpu.iota {dimensions = array<i32: 1>} : vector<16x8xi32>
    %88 = vector.broadcast %86 : vector<16x1xi32> to vector<16x8xi32>
    %89 = arith.cmpi eq, %87, %88 : vector<16x8xi32>
    %cst_29 = arith.constant 1.000000e+00 : f32
    %cst_30 = arith.constant 0.000000e+00 : f32
    %90 = vector.broadcast %cst_29 : f32 to vector<16x8xf32>
    %91 = vector.broadcast %cst_30 : f32 to vector<16x8xf32>
    %92 = arith.select %89, %90, %91 : vector<16x8xi1>, vector<16x8xf32>
    %93 = tpu.iota {dimensions = array<i32: 0>} : vector<2x16xi32>
    %c8_i32_31 = arith.constant 8 : i32
    %94 = vector.broadcast %c8_i32_31 : i32 to vector<2x16xi32>
    %95 = arith.muli %93, %94 : vector<2x16xi32>
    %96 = vector.broadcast %60 : vector<1x16xi32> to vector<2x16xi32>
    %97 = arith.cmpi sge, %96, %95 : vector<2x16xi32>
    %c8_i32_32 = arith.constant 8 : i32
    %98 = vector.broadcast %c8_i32_32 : i32 to vector<2x16xi32>
    %99 = arith.addi %95, %98 : vector<2x16xi32>
    %100 = vector.broadcast %60 : vector<1x16xi32> to vector<2x16xi32>
    %101 = arith.cmpi slt, %100, %99 : vector<2x16xi32>
    %102 = arith.andi %97, %101 : vector<2x16xi1>
    %103 = arith.extui %102 : vector<2x16xi1> to vector<2x16xi32>
    %104 = arith.sitofp %103 : vector<2x16xi32> to vector<2x16xf32>
    %c0_33 = arith.constant 0 : index
    %c0_34 = arith.constant 0 : index
    %105 = vector.load %arg9[%c0_33, %c0_34] : memref<2x8xf32, #tpu.memory_space<vmem>>, vector<2x8xf32>
    %106 = vector.broadcast %69 : vector<16x1xf32> to vector<16x8xf32>
    %107 = arith.mulf %106, %92 : vector<16x8xf32>
    %cst_35 = arith.constant dense<0.000000e+00> : vector<2x8xf32>
    %108 = tpu.matmul %104, %107, %cst_35 {dimension_numbers = #tpu.dot_dimension_numbers<[1], [0], [0], [1], [0, 0, 1, 1], [], []>} : vector<2x16xf32>, vector<16x8xf32>, vector<2x8xf32> -> vector<2x8xf32>
    %109 = arith.addf %105, %108 : vector<2x8xf32>
    %c0_36 = arith.constant 0 : index
    %c0_37 = arith.constant 0 : index
    %110 = vector.load %arg9[%c0_36, %c0_37] : memref<2x8xf32, #tpu.memory_space<vmem>>, vector<2x8xf32>
    tpu.vector_store %arg9[%c0_36, %c0_37], %109 {strides = array<i32>} : memref<2x8xf32, #tpu.memory_space<vmem>>, vector<2x8xf32>,
    %111 = arith.extui %1 : i1 to i32
    %c0_i32_38 = arith.constant 0 : i32
    %112 = arith.cmpi ne, %111, %c0_i32_38 : i32
    scf.if %112 {
      %c0_39 = arith.constant 0 : index
      %c0_40 = arith.constant 0 : index
      %113 = vector.load %arg9[%c0_39, %c0_40] : memref<2x8xf32, #tpu.memory_space<vmem>>, vector<2x8xf32>
      %cst_41 = arith.constant dense<0xFF800000> : vector<2xf32>
      %114 = vector.multi_reduction <maximumf>, %113, %cst_41 [1] : vector<2x8xf32> to vector<2xf32>
      %115 = vector.shape_cast %114 : vector<2xf32> to vector<2x1xf32>
      %116 = vector.broadcast %115 : vector<2x1xf32> to vector<2x8xf32>
      %117 = arith.subf %113, %116 : vector<2x8xf32>
      %118 = math.exp %117 : vector<2x8xf32>
      %cst_42 = arith.constant dense<0.000000e+00> : vector<2xf32>
      %119 = vector.multi_reduction <add>, %118, %cst_42 [1] : vector<2x8xf32> to vector<2xf32>
      %120 = vector.shape_cast %119 : vector<2xf32> to vector<2x1xf32>
      %121 = vector.broadcast %120 : vector<2x1xf32> to vector<2x8xf32>
      %122 = arith.divf %118, %121 : vector<2x8xf32>
      %c0_43 = arith.constant 0 : index
      %c0_44 = arith.constant 0 : index
      %123 = vector.load %arg7[%c0_43, %c0_44] : memref<2x8xf32, #tpu.memory_space<vmem>>, vector<2x8xf32>
      tpu.vector_store %arg7[%c0_43, %c0_44], %122 {strides = array<i32>} : memref<2x8xf32, #tpu.memory_space<vmem>>, vector<2x8xf32>,
    } else {
    }
    return
  }
  func.func @transform_0(%arg0: i32) -> (i32, i32) {
    %c0_i32 = arith.constant 0 : i32
    %c0_i32_0 = arith.constant 0 : i32
    %c0_i32_1 = arith.constant 0 : i32
    return %c0_i32, %c0_i32_0 : i32, i32
  }
  func.func @transform_1(%arg0: i32) -> (i32, i32) {
    %c0_i32 = arith.constant 0 : i32
    %c0_i32_0 = arith.constant 0 : i32
    return %arg0, %c0_i32 : i32, i32
  }
  func.func @transform_2(%arg0: i32) -> (i32, i32) {
    %c0_i32 = arith.constant 0 : i32
    %c0_i32_0 = arith.constant 0 : i32
    %c0_i32_1 = arith.constant 0 : i32
    return %c0_i32, %c0_i32_0 : i32, i32
  }
  func.func @transform_3(%arg0: i32) -> (i32, i32) {
    %c0_i32 = arith.constant 0 : i32
    %c0_i32_0 = arith.constant 0 : i32
    %c0_i32_1 = arith.constant 0 : i32
    return %c0_i32, %c0_i32_0 : i32, i32
  }
  func.func @transform_4(%arg0: i32) -> (i32, i32) {
    %c0_i32 = arith.constant 0 : i32
    %c0_i32_0 = arith.constant 0 : i32
    %c0_i32_1 = arith.constant 0 : i32
    return %c0_i32, %c0_i32_0 : i32, i32
  }
  func.func @transform_5(%arg0: i32) -> (i32, i32) {
    %c0_i32 = arith.constant 0 : i32
    %c0_i32_0 = arith.constant 0 : i32
    %c0_i32_1 = arith.constant 0 : i32
    return %c0_i32, %c0_i32_0 : i32, i32
  }
  func.func @transform_6(%arg0: i32) -> (i32, i32) {
    %c0_i32 = arith.constant 0 : i32
    %c0_i32_0 = arith.constant 0 : i32
    %c0_i32_1 = arith.constant 0 : i32
    return %c0_i32, %c0_i32_0 : i32, i32
  }
}

</mosaic_0001>

<bundles_post_ra>
// kernel: tpu_custom_call.1
= control target key start
LH: loop header
LB: loop body
LE: loop exit
PB: predicated region body
PF: predicated region fallthrough
CT: control target
= control target key end

     0   :  { %11 = vsyncpa [#allocation5], 0  ;;  %s1011_s0 = inlined_call_operand.hbm [shape: f32[2,32], index: 0, kind: input, shape index: {}]   ;;  %s1012_s1 = inlined_call_operand.hbm [shape: f32[16,16], index: 1, kind: input, shape index: {}]   ;;  %s1013_s2 = inlined_call_operand.hbm [shape: f32[32,128], index: 2, kind: input, shape index: {}]   ;;  %s1014_s3 = inlined_call_operand.hbm [shape: f32[16,128], index: 3, kind: input, shape index: {}]   ;;  %s1015_s4 = inlined_call_operand.vmem [shape: f32[1,128], index: 4, kind: input, shape index: {}]   ;;  %s1016_s5 = inlined_call_operand.vmem [shape: f32[1,128], index: 5, kind: input, shape index: {}]   ;;  %s1017_s6 = inlined_call_operand.hbm [shape: f32[2,8], index: 6, kind: output, shape index: {}]  }
   0x1   :  { %12 = vsyncpa [#allocation8], 0 }
   0x2   :  { %13 = vsyncpa [#allocation11], 0 }
   0x3   :  { %14 = vsyncpa [#allocation6], 0  ;;  %s805_s21 = smov [#allocation7]   ;;  %s687_s25 = scalar_lea.hbm %s1012_s1, 256 }
   0x4   :  { %s30_s22 = sshll.u32 %s805_s21, 4  ;;  %p688_p0 = scmp.ne.s32.totalorder %s1012_s1, %s687_s25  ;;  %s31_s22 = int_to_ptr.vmem [resolvable:$true] %s30_s22 }
   0x5   :  { %p691_p1 = scmp.lt.u32.totalorder %s687_s25, %s1012_s1 }
   0x7   :  { %p693_p2 = pnand %p691_p1, %p688_p0 }
   0x9   :  { %696 = shalt.err (!%p693_p2)
}
   0xa   :  { %s697_s30 = scalar_lea.vmem %s31_s22, 256  ;;  %p702_p4 = scmp.lt.s32.totalorder %s31_s22, %s31_s22 }
   0xb   :  { %p698_p3 = scmp.ne.s32.totalorder %s31_s22, %s697_s30  ;;  %p703_p5 = scmp.lt.s32.totalorder %s697_s30, %s697_s30 }
   0xd   :  { %p704_p6 = por %p703_p5, %p702_p4 }
   0xf   :  { %p705_p7 = pnand %p704_p6, %p698_p3 }
  0x11   :  { %708 = shalt.err (!%p705_p7)
}
  0x12   :  { %s806_s7 = smov 128   ;;  %s807_s8 = smov 8  }
  0x13   :  { %36 = dma.hbm_to_vmem [thread:$0]  %s1012_s1, 256, %s31_s22, [#allocation8], %s806_s7, %s806_s7, %s807_s8  }
  0x14   :  { %s808_s11 = smov [#allocation4]   ;;  %s809_s13 = smov [#allocation9]  }
  0x15   :  { %s21_s12 = sshll.u32 %s808_s11, 4  ;;  %s42_s14 = sshll.u32 %s809_s13, 4  ;;  %s22_s12 = int_to_ptr.vmem [resolvable:$true] %s21_s12  ;;  %s43_s14 = int_to_ptr.vmem [resolvable:$true] %s42_s14 }
  0x16   :  { %s709_s17 = scalar_lea.hbm %s1011_s0, 32 }
  0x17   :  { %p710_p8 = scmp.ne.s32.totalorder %s1011_s0, %s709_s17  ;;  %p713_p9 = scmp.lt.u32.totalorder %s709_s17, %s1011_s0 }
  0x19   :  { %p715_p10 = pnand %p713_p9, %p710_p8 }
  0x1b   :  { %718 = shalt.err (!%p715_p10)
}
  0x1c   :  { %s719_s1 = scalar_lea.vmem %s22_s12, 32  ;;  %p724_p12 = scmp.lt.s32.totalorder %s22_s12, %s22_s12 }
  0x1d   :  { %p720_p11 = scmp.ne.s32.totalorder %s22_s12, %s719_s1  ;;  %p725_p13 = scmp.lt.s32.totalorder %s719_s1, %s719_s1 }
  0x1f   :  { %p726_p0 = por %p725_p13, %p724_p12 }
  0x21   :  { %p727_p1 = pnand %p726_p0, %p720_p11 }
  0x23   :  { %730 = shalt.err (!%p727_p1)
}
  0x24   :  { %24 = dma.hbm_to_vmem [thread:$0]  %s1011_s0, 32, %s22_s12, [#allocation5]  }
  0x25   :  { %s731_s26 = scalar_lea.hbm %s1013_s2, 512 }
  0x26   :  { %p732_p2 = scmp.ne.s32.totalorder %s1013_s2, %s731_s26  ;;  %p735_p3 = scmp.lt.u32.totalorder %s731_s26, %s1013_s2 }
  0x28   :  { %p737_p4 = pnand %p735_p3, %p732_p2 }
  0x2a   :  { %740 = shalt.err (!%p737_p4)
}
  0x2b   :  { %s741_s9 = scalar_lea.vmem %s43_s14, 512  ;;  %p746_p6 = scmp.lt.s32.totalorder %s43_s14, %s43_s14 }
  0x2c   :  { %p742_p5 = scmp.ne.s32.totalorder %s43_s14, %s741_s9  ;;  %p747_p7 = scmp.lt.s32.totalorder %s741_s9, %s741_s9 }
  0x2e   :  { %p748_p8 = por %p747_p7, %p746_p6 }
  0x30   :  { %p749_p9 = pnand %p748_p8, %p742_p5 }
  0x32   :  { %752 = shalt.err (!%p749_p9)
}
  0x33   :  { %48 = dma.hbm_to_vmem [thread:$0]  %s1013_s2, 512, %s43_s14, [#allocation8], %s806_s7, %s806_s7, %s807_s8  }
  0x34   :  { %s810_s11 = smov [#allocation10]   ;;  %s753_s16 = scalar_lea.hbm %s1014_s3, 256 }
  0x35   :  { %s54_s12 = sshll.u32 %s810_s11, 4  ;;  %p754_p10 = scmp.ne.s32.totalorder %s1014_s3, %s753_s16  ;;  %s55_s12 = int_to_ptr.vmem [resolvable:$true] %s54_s12 }
  0x36   :  { %p757_p11 = scmp.lt.u32.totalorder %s753_s16, %s1014_s3 }
  0x38   :  { %p759_p12 = pnand %p757_p11, %p754_p10 }
  0x3a   :  { %762 = shalt.err (!%p759_p12)
}
  0x3b   :  { %s763_s21 = scalar_lea.vmem %s55_s12, 256  ;;  %p768_p0 = scmp.lt.s32.totalorder %s55_s12, %s55_s12 }
  0x3c   :  { %p764_p13 = scmp.ne.s32.totalorder %s55_s12, %s763_s21  ;;  %p769_p1 = scmp.lt.s32.totalorder %s763_s21, %s763_s21 }
  0x3e   :  { %p770_p2 = por %p769_p1, %p768_p0 }
  0x40   :  { %p771_p3 = pnand %p770_p2, %p764_p13 }
  0x42   :  { %774 = shalt.err (!%p771_p3)
}
  0x43   :  { %60 = dma.hbm_to_vmem [thread:$0]  %s1014_s3, 256, %s55_s12, [#allocation11], %s806_s7, %s806_s7, %s807_s8  }
  0x44   :  { %797 = dma.done.wait [#allocation5], 32  }
  0x45   :  { %798 = vsyncadd [#allocation5], 4294967264 }
  0x46   :  { %799 = dma.done.wait [#allocation8], 768  }
  0x47   :  { %800 = vsyncadd [#allocation8], 4294966528 }
  0x48   :  { %801 = dma.done.wait [#allocation11], 256  }
  0x49   :  { %802 = vsyncadd [#allocation11], 4294967040  ;;  %v811_v0 = vmov 0.0|0.0   ;;  %vm812_vm0 = vmmov 0   ;;  %v813_v1 = vmov 0.0   ;;  %v174_v2 = vlaneseq  ;;  %v82_v7 = vld [vmem:[#allocation9] sm:$0xff] }
  0x4a   :  { %654 = vmatprep.subr.bf16.mxu0 %v811_v0  ;;  %632 = vmatprep.mubr.msk.f32.mxu0 %vm812_vm0, %v813_v1  ;;  %v83_v8 = vld [vmem:[#allocation9 + $0x8] sm:$0xff]  ;;  %v84_v9 = vld [vmem:[#allocation9 + $0x10] sm:$0xff]  ;;  %v85_v12 = vld [vmem:[#allocation9 + $0x18] sm:$0xff]  ;;  %vm195_vm4 = vcmask 15360   ;;  %vm93_vm8 = vcmask 261120   ;;  %vm233_vm15 = vcmask 1041408  }
  0x4b   :  { %v910_v3 = vshrl.u32 %v174_v2, 7  ;;  %v912_v4 = vand.u32 127, %v174_v2  ;;  %v655_v11 = vpack.c.bf16 %v83_v8, %v82_v7  ;;  %v658_v13 = vpack.c.bf16 %v85_v12, %v84_v9  ;;  %v81_v22 = vld [vmem:[#allocation4] sm:$0x3]  ;;  %v597_v62 = vld [vmem:[%s1015_s4] ss:$0 sm:$0xff] }
  0x4c   :  { %v173_v7 = vld [vmem:[#allocation10 + $0x8] sm:$0xff]  ;;  %v171_v12 = vld [vmem:[#allocation7 + $0x8] sm:$0xff] }
  0x4d   :  { %v915_v5 = vmul.u32 8, %v912_v4  ;;  %v176_v6 = vadd.s32 8, %v910_v3  ;;  %656 = vmatpush3.bf16.msra.mxu0 %v655_v11  ;;  %v170_v11 = vld [vmem:[#allocation7] sm:$0xff] }
  0x4e   :  { %657 = vmatprep.subr.bf16.mxu0 %v811_v0 }
  0x4f   :  { %vm186_vm1 = vcmp.ge.s32.totalorder %v910_v3, %v915_v5  ;;  %v921_v10 = vadd.s32 8, %v915_v5  ;;  %vm187_vm2 = vcmp.ge.s32.totalorder %v176_v6, %v915_v5 }
  0x51   :  { %vm189_vm3 = vcmp.lt.s32.totalorder %v910_v3, %v921_v10  ;;  %vm190_vm5 = vcmp.lt.s32.totalorder %v176_v6, %v921_v10  ;;  %659 = vmatpush3.bf16.msra.mxu0 %v658_v13 }
  0x52   :  { %vm927_vm6 = vmand %vm186_vm1, %vm189_vm3  ;;  %vm339_vm1 = vcmask 130048  }
  0x53   :  { %v193_v15 = vsel %vm927_vm6, %v912_v4, 0  ;;  %vm935_vm7 = vmand %vm187_vm2, %vm190_vm5  ;;  %v599_v29 = vsel %vm927_vm6, 1.0, %v813_v1  ;;  %vm168_vm2 = vcmask 58368   ;;  %vm327_vm5 = vcmask 123904  }
  0x54   :  { %v196_v17 = vsel %vm195_vm4, %v193_v15, 0  ;;  %v194_v18 = vsel %vm935_vm7, %v912_v4, 0  ;;  %633 = vmatmul.mubr.msk.f32.vlgmr.msra.gmra.mrb[0].mxu0 %vm93_vm8, %v81_v22  ;;  %637 = vmatprep.mubr.msk.f32.mxu1 %vm195_vm4, %v599_v29  ;;  %v606_v15 = vld [vmem:[%s1016_s5] ss:$0 sm:$0xff]  ;;  %169 = vst.msk [vmem:[#allocation3] sm:$0x3] %vm168_vm2, %v813_v1 }
  0x55   :  { %v198_v19 = vshrl.u32 %v196_v17, 16  ;;  %v197_v20 = vand.u32 65535, %v196_v17  ;;  %v209_v21 = vsel %vm195_vm4, %v194_v18, 0  ;;  %s814_s5 = smov [#allocation12]  }
  0x56   :  { %v211_v23 = vshrl.u32 %v209_v21, 16  ;;  %v210_v24 = vand.u32 65535, %v209_v21  ;;  %s586_s1 = sshll.u32 %s814_s5, 4  ;;  %s587_s1 = int_to_ptr.vmem [resolvable:$true] %s586_s1 }
  0x57   :  { %v200_v25 = vcvt.s32.f32 %v198_v19  ;;  %v199_v26 = vcvt.s32.f32 %v197_v20  ;;  %s775_s22 = scalar_lea.vmem %s587_s1, 32  ;;  %p780_p5 = scmp.lt.s32.totalorder %s587_s1, %s587_s1 }
  0x58   :  { %v213_v27 = vcvt.s32.f32 %v211_v23  ;;  %v212_v28 = vcvt.s32.f32 %v210_v24  ;;  %p776_p4 = scmp.ne.s32.totalorder %s587_s1, %s775_s22  ;;  %p781_p6 = scmp.lt.s32.totalorder %s775_s22, %s775_s22 }
  0x59   :  { %203 = vadd.xlane.f32.xlu0 %v200_v25  ;;  %201 = vadd.xlane.f32.xlu1 %v199_v26 }
  0x5a   :  { %p782_p7 = por %p781_p6, %p780_p5 }
  0x5c   :  { %p783_p8 = pnand %p782_p7, %p776_p4 }
  0x5d   :  { %216 = vadd.xlane.f32.xlu0 %v213_v27  ;;  %214 = vadd.xlane.f32.xlu1 %v212_v28 }
  0xe6   :  { %v204_v30 = vpop.xlane.xlu0 %203  ;;  %v202_v32 = vpop.xlane.xlu1 %201 }
  0xe7   :  { %v206_v31 = vcvt.f32.s32 %v204_v30  ;;  %v205_v33 = vcvt.f32.s32 %v202_v32 }
  0xe9   :  { %v207_v34 = vshll.u32 %v206_v31, 16 }
  0xea   :  { %v217_v35 = vpop.xlane.xlu0 %216  ;;  %v215_v38 = vpop.xlane.xlu1 %214 }
  0xeb   :  { %v208_v36 = vadd.s32 %v207_v34, %v205_v33  ;;  %v219_v37 = vcvt.f32.s32 %v217_v35  ;;  %v218_v39 = vcvt.f32.s32 %v215_v38 }
  0xed   :  { %v312_v40 = vmul.u32 8, %v208_v36  ;;  %v220_v41 = vshll.u32 %v219_v37, 16 }
  0xef   :  { %v314_v42 = vsub.s32 %v910_v3, %v312_v40  ;;  %v221_v43 = vadd.s32 %v220_v41, %v218_v39 }
  0xf1   :  { %v316_v44 = vmul.u32 2, %v314_v42  ;;  %v313_v45 = vmul.u32 8, %v221_v43 }
  0xf3   :  { %v949_v46 = vadd.s32 %v316_v44, %v208_v36  ;;  %v315_v47 = vsub.s32 %v176_v6, %v313_v45  ;;  %v172_v6 = vld [vmem:[#allocation10] sm:$0xff] }
  0xf4   :  { %v660_v8 = vpack.c.bf16 %v173_v7, %v172_v6 }
  0xf5   :  { %v317_v48 = vmul.u32 2, %v315_v47  ;;  %vm438_vm9 = vcmp.ge.s32.totalorder %v949_v46, %v915_v5  ;;  %vm440_vm10 = vcmp.lt.s32.totalorder %v949_v46, %v921_v10 }
  0xf6   :  { %vm442_vm11 = vmand %vm438_vm9, %vm440_vm10 }
  0xf7   :  { %v955_v49 = vadd.s32 %v317_v48, %v221_v43  ;;  %v444_v50 = vsel %vm442_vm11, %v912_v4, 0 }
  0xf8   :  { %v446_v51 = vsel %vm195_vm4, %v444_v50, 0 }
  0xf9   :  { %v448_v52 = vshrl.u32 %v446_v51, 16  ;;  %v447_v53 = vand.u32 65535, %v446_v51  ;;  %vm439_vm12 = vcmp.ge.s32.totalorder %v955_v49, %v915_v5  ;;  %vm441_vm13 = vcmp.lt.s32.totalorder %v955_v49, %v921_v10 }
  0xfa   :  { %vm443_vm14 = vmand %vm439_vm12, %vm441_vm13  ;;  %v600_v10 = vsel %vm935_vm7, 1.0, %v813_v1 }
  0xfb   :  { %v450_v54 = vcvt.s32.f32 %v448_v52  ;;  %v445_v55 = vsel %vm443_vm14, %v912_v4, 0  ;;  %v449_v57 = vcvt.s32.f32 %v447_v53 }
  0xfc   :  { %v459_v56 = vsel %vm195_vm4, %v445_v55, 0 }
  0xfd   :  { %453 = vadd.xlane.f32.xlu0 %v450_v54  ;;  %v461_v58 = vshrl.u32 %v459_v56, 16  ;;  %v460_v59 = vand.u32 65535, %v459_v56 }
  0xff   :  { %v463_v60 = vcvt.s32.f32 %v461_v58  ;;  %v462_v61 = vcvt.s32.f32 %v460_v59 }
 0x101   :  { %451 = vadd.xlane.f32.xlu0 %v449_v57  ;;  %466 = vadd.xlane.f32.xlu1 %v463_v60 }
 0x105   :  { %464 = vadd.xlane.f32.xlu1 %v462_v61 }
 0x127   :  { %v163_v63 = vpop.f32.mrb[0].mxu0 }
 0x128   :  { %v164_v2 = vadd.f32 %v597_v62, %v163_v63  ;;  %v634_v5 = vpop.f32.mrb[1].mxu0 }
 0x12a   :  { %167 = vst [vmem:[#allocation2] sm:$0x3] %v164_v2 }
 0x131   :  { %v226_v9 = vld [vmem:[#allocation2] sm:$0x3] }
 0x132   :  { %635 = vmatprep.subr.msk.mxu1 %vm233_vm15, %v226_v9 }
 0x133   :  { %636 = vmatpush3.msk.msra.mxu1 %vm233_vm15, %v226_v9 }
 0x134   :  { %638 = vmatmul.mubr.msk.f32.vlgmr.msra.gmra.mrb[0].mxu1 %vm195_vm4, %v600_v10  ;;  %661 = vmatprep.subr.bf16.mxu1 %v660_v8 }
 0x135   :  { %663 = vmatpush3.bf16.msra.mxu1 %v660_v8  ;;  %644 = vmatprep.mubr.msk.f32.mxu1 %vm339_vm1, %v170_v11 }
 0x136   :  { %664 = vmatprep.subr.bf16.mxu1 %v811_v0  ;;  %v321_v0 = vmul.u32 8, %v910_v3 }
 0x138   :  { %v323_v20 = vadd.s32 8, %v321_v0 }
 0x13a   :  { %vm324_vm3 = vcmp.lt.s32.totalorder %v912_v4, %v323_v20 }
 0x13c   :  { %645 = vmatmul.mubr.msk.f32.vlgmr.msra.gmra.mrb[0].mxu1 %vm339_vm1, %v171_v12 }
 0x13d   :  { %651 = vmatprep.mubr.msk.f32.mxu1 %vm812_vm0, %v813_v1  ;;  %vm322_vm0 = vcmp.ge.s32.totalorder %v912_v4, %v321_v0 }
 0x13e   :  { %vm325_vm4 = vmand %vm322_vm0, %vm324_vm3 }
 0x13f   :  { %v326_v21 = vsel %vm325_vm4, %v910_v3, 0 }
 0x140   :  { %v328_v22 = vsel %vm327_vm5, %v326_v21, 0 }
 0x141   :  { %v329_v23 = vrot.slane %v328_v22, 4 }
 0x143   :  { %v330_v24 = vadd.s32 %v329_v23, %v328_v22 }
 0x145   :  { %v331_v25 = vrot.slane %v330_v24, 2 }
 0x147   :  { %v332_v27 = vadd.s32 %v331_v25, %v330_v24 }
 0x149   :  { %v333_v29 = vrot.slane %v332_v27, 1 }
 0x14b   :  { %v334_v34 = vadd.s32 %v333_v29, %v332_v27 }
 0x14d   :  { %v335_v39 = vmul.u32 8, %v334_v34 }
 0x14f   :  { %v336_v41 = vsub.s32 %v912_v4, %v335_v39 }
 0x151   :  { %v337_v44 = vmul.u32 2, %v336_v41 }
 0x153   :  { %v338_v48 = vadd.s32 %v337_v44, %v334_v34 }
 0x155   :  { %vm480_vm8 = vcmp.ge.s32.totalorder %v338_v48, %v321_v0  ;;  %vm481_vm9 = vcmp.lt.s32.totalorder %v338_v48, %v323_v20 }
 0x156   :  { %vm482_vm10 = vmand %vm480_vm8, %vm481_vm9 }
 0x18a   :  { %v454_v28 = vpop.xlane.xlu0 %453 }
 0x18b   :  { %v456_v31 = vcvt.f32.s32 %v454_v28 }
 0x18d   :  { %v457_v37 = vshll.u32 %v456_v31, 16 }
 0x18e   :  { %v467_v26 = vpop.xlane.xlu1 %466  ;;  %v452_v33 = vpop.xlane.xlu0 %451 }
 0x18f   :  { %v469_v30 = vcvt.f32.s32 %v467_v26  ;;  %v455_v38 = vcvt.f32.s32 %v452_v33 }
 0x191   :  { %v470_v35 = vshll.u32 %v469_v30, 16  ;;  %v458_v40 = vadd.s32 %v457_v37, %v455_v38 }
 0x192   :  { %v465_v32 = vpop.xlane.xlu1 %464 }
 0x193   :  { %v468_v36 = vcvt.f32.s32 %v465_v32  ;;  %v472_v43 = vmul.u32 8, %v458_v40 }
 0x195   :  { %v471_v3 = vadd.s32 %v470_v35, %v468_v36  ;;  %v474_v47 = vsub.s32 %v949_v46, %v472_v43  ;;  %v607_v46 = vsel %vm482_vm10, 1.0, %v813_v1 }
 0x197   :  { %v473_v42 = vmul.u32 8, %v471_v3  ;;  %vm476_vm7 = vcmp.eq.s32.totalorder %v912_v4, %v474_v47 }
 0x198   :  { %v478_v53 = vsel %vm476_vm7, 1.0, %v813_v1 }
 0x199   :  { %v475_v45 = vsub.s32 %v955_v49, %v473_v42  ;;  %v485_v49 = vld [vmem:[#allocation3] sm:$0x3] }
 0x19b   :  { %vm477_vm6 = vcmp.eq.s32.totalorder %v912_v4, %v475_v45 }
 0x19c   :  { %v479_v50 = vsel %vm477_vm6, 1.0, %v813_v1 }
 0x20f   :  { %v646_v13 = vpop.f32.mrb[0].mxu1 }
 0x210   :  { %679 = vtanh.f32 %v646_v13  ;;  %v412_v14 = vpop.f32.mrb[1].mxu1 }
 0x211   :  { %681 = vtanh.f32 %v412_v14 }
 0x21a   :  { %v680_v16 = vpop.eup %679 }
 0x21b   :  { %v682_v17 = vpop.eup %681  ;;  %v431_v18 = vmul.f32 %v680_v16, %v606_v15 }
 0x21c   :  { %v430_v19 = vmul.f32 %v682_v17, %v606_v15 }
 0x21d   :  { %434 = vadd.xlane.f32.xlu1 %v431_v18 }
 0x21e   :  { %432 = vadd.xlane.f32.xlu0 %v430_v19 }
 0x2aa   :  { %v435_v51 = vpop.xlane.xlu1 %434 }
 0x2ab   :  { %v487_v52 = vmul.f32 %v479_v50, %v435_v51  ;;  %v433_v54 = vpop.xlane.xlu0 %432 }
 0x2ac   :  { %v486_v55 = vmul.f32 %v478_v53, %v433_v54 }
 0x2ae   :  { %v665_v56 = vpack.c.bf16 %v487_v52, %v486_v55 }
 0x2b0   :  { %666 = vmatpush3.bf16.msra.mxu1 %v665_v56 }
 0x2b3   :  { %652 = vmatmul.mubr.msk.f32.vlgmr.msra.gmra.mrb[2].mxu1 %vm339_vm1, %v607_v46 }
 0x386   :  { %v557_v57 = vpop.f32.mrb[2].mxu1 }
 0x387   :  { %v561_v4 = vadd.f32 %v557_v57, %v485_v49  ;;  %v653_v58 = vpop.f32.mrb[3].mxu1 }
 0x389   :  { %563 = vst.msk [vmem:[#allocation3] sm:$0x3] %vm168_vm2, %v561_v4 }
 0x390   :  { %v567_v59 = vld [vmem:[#allocation3] sm:$0x3] }
 0x391   :  { %v568_v60 = vsel %vm168_vm2, %v567_v59, -inf }
 0x392   :  { %569 = vmax.xlane.f32.xlu0 %v568_v60 }
 0x41f   :  { %v570_v61 = vpop.xlane.xlu0 %569 }
 0x420   :  { %v571_v62 = vsub.f32 %v567_v59, %v570_v61 }
 0x422   :  { %v572_v63 = vmul.f32 1.442695, %v571_v62 }
 0x424   :  { %683 = vpow2.f32 %v572_v63 }
 0x42e   :  { %v684_v2 = vpop.eup %683 }
 0x42f   :  { %v574_v5 = vsel %vm168_vm2, %v684_v2, 0.0 }
 0x430   :  { %575 = vadd.xlane.f32.xlu1 %v574_v5 }
 0x4bd   :  { %v576_v1 = vpop.xlane.xlu1 %575 }
 0x4be   :  { %685 = vrcp.f32 %v576_v1 }
 0x4c8   :  { %v686_v6 = vpop.eup %685 }
 0x4c9   :  { %v578_v7 = vmul.f32 %v686_v6, %v684_v2 }
 0x4cb   :  { %579 = vst.msk [vmem:[#allocation12] sm:$0x3] %vm168_vm2, %v578_v7 }
 0x4cc   :  { %786 = shalt.err (!%p783_p8)
}
 0x4cd   :  { %s787_s25 = scalar_lea.hbm %s1017_s6, 32 }
 0x4ce   :  { %p788_p9 = scmp.ne.s32.totalorder %s1017_s6, %s787_s25  ;;  %p791_p10 = scmp.lt.u32.totalorder %s787_s25, %s1017_s6 }
 0x4d0   :  { %p793_p11 = pnand %p791_p10, %p788_p9 }
 0x4d2   :  { %796 = shalt.err (!%p793_p11)
}
 0x4d3   :  { %589 = dma.vmem_to_hbm [thread:$0]  %s587_s1, 32, %s1017_s6, [#allocation6]  }
 0x4d4   :  { %803 = dma.done.wait [#allocation6], 32  }
 0x4d5   :  { %804 = vsyncadd [#allocation6], 4294967264 }
 0x4d6   :  { %593 = vsyncpa [#allocation5], 1 }
 0x4d7   :  { %594 = vsyncpa [#allocation8], 1 }
 0x4d8   :  { %595 = vsyncpa [#allocation11], 1 }
 0x4d9   :  { %596 = vsyncpa [#allocation6], 1 }

</bundles_post_ra>
